<compile_context>
chip_gen: v7x
topology: tpu7x:2x2x1
jax: 0.10.0
libtpu: 0.0.40
codegen_flags: <defaults>
</compile_context>

<pallas_src>
import jax
import jax.numpy as jnp
from jax.experimental import pallas as pl
from jax.experimental.pallas import tpu as pltpu

OBS_SIZE = 17
AC_SIZE = 4
HIDDEN = 4

LANES = 128          # TPU lane width: batch tiles must be a multiple of this.
TILE_B = 8192        # default batch tile (17*8192*4 B = ~0.5 MiB/buffer, well under VMEM)
PALLAS_MIN_BATCH = 1024   # below this, pallas_call overhead dominates -> plain XLA


def _round_up(n, m):
    return ((n + m - 1) // m) * m


def mlp_kernel(x_ref, w1_ref, b1_ref, w2_ref, b2_ref, o_ref):
    """x_ref: (OBS_SIZE, TILE_B) VMEM, batch on lanes.
    w*/b* : flat 1-D f32 refs in SMEM.
    o_ref : (AC_SIZE, TILE_B) VMEM, batch on lanes (lane-dense store)."""
    # Load the 17 feature rows once; each row is (1, TILE_B), fully lane-dense.
    x_rows = [x_ref[pl.ds(k, 1), :].astype(jnp.float32) for k in range(OBS_SIZE)]

    # Layer 1: 4 hidden units = unrolled scalar-broadcast FMAs on the VPU.
    # Bias is folded into the accumulator init (no separate broadcast+add).
    h_rows = []
    for j in range(HIDDEN):
        acc = x_rows[0] * w1_ref[0 * HIDDEN + j] + b1_ref[j]
        for k in range(1, OBS_SIZE):
            acc = acc + x_rows[k] * w1_ref[k * HIDDEN + j]
        h_rows.append(jnp.tanh(acc))

    # Layer 2: 4 outputs, same unrolled FMA pattern, then final tanh.
    for a in range(AC_SIZE):
        acc = h_rows[0] * w2_ref[0 * AC_SIZE + a] + b2_ref[a]
        for j in range(1, HIDDEN):
            acc = acc + h_rows[j] * w2_ref[j * AC_SIZE + a]
        o_ref[pl.ds(a, 1), :] = jnp.tanh(acc).astype(o_ref.dtype)


def reference_mlp(x, w1, b1, w2, b2):
    h = jnp.tanh(jnp.dot(x, w1, precision=jax.lax.Precision.HIGHEST) + b1)
    y = jnp.dot(h, w2, precision=jax.lax.Precision.HIGHEST) + b2
    return jnp.tanh(y)


def simple_mlp(x, w1, b1, w2, b2, tile_b=TILE_B, use_pallas=None):
    """x: (B, OBS_SIZE); w1: (OBS_SIZE, HIDDEN); b1: (HIDDEN,);
    w2: (HIDDEN, AC_SIZE); b2: (AC_SIZE,).  Returns (B, AC_SIZE)."""
    B = x.shape[0]
    if use_pallas is None:
        use_pallas = B >= PALLAS_MIN_BATCH
    if not use_pallas:
        # Tiny batch: the whole problem is <1 KiB; let XLA fuse it inline.
        return reference_mlp(x, w1, b1, w2, b2)

    # Batch tile: multiple of the 128-lane width, no larger than needed.
    tb = max(LANES, _round_up(min(tile_b, _round_up(B, LANES)), LANES))
    Bp = _round_up(B, tb)
    nb = Bp // tb

    # Lane-dense layout: batch on the last (lane) axis; pad so every tile is full.
    xt = x.T                                      # (OBS_SIZE, B)
    if Bp != B:
        xt = jnp.pad(xt, ((0, 0), (0, Bp - B)))   # padded cols sliced away below

    out_t = pl.pallas_call(
        mlp_kernel,
        out_shape=jax.ShapeDtypeStruct((AC_SIZE, Bp), x.dtype),
        grid=(nb,),
        in_specs=[
            # x^T batch tile: (17, TILE_B), second-to-last == full dim, last is 128-multiple.
            pl.BlockSpec((OBS_SIZE, tb), lambda i: (0, i)),
            # Weights/biases: flat 1-D f32 in SMEM (cheap scalar reads, no 2-D SMEM padding).
            pl.BlockSpec(memory_space=pltpu.MemorySpace.SMEM),
            pl.BlockSpec(memory_space=pltpu.MemorySpace.SMEM),
            pl.BlockSpec(memory_space=pltpu.MemorySpace.SMEM),
            pl.BlockSpec(memory_space=pltpu.MemorySpace.SMEM),
        ],
        out_specs=pl.BlockSpec((AC_SIZE, tb), lambda i: (0, i)),
        compiler_params=pltpu.CompilerParams(
            # Batch tiles are independent: shard across TensorCores on v7x.
            dimension_semantics=("parallel",),
        ),
    )(xt, w1.reshape(-1), b1.reshape(-1), w2.reshape(-1), b2.reshape(-1))

    return out_t[:, :B].T


if __name__ == "__main__":
    key = jax.random.PRNGKey(0)
    kx, k1, kb1, k2, kb2 = jax.random.split(key, 5)

    B = 256
    x = jax.random.normal(kx, (B, OBS_SIZE), dtype=jnp.float32)

    # Deterministic parameter init (uniform ~ torch Linear default scale).
    lim1 = 1.0 / OBS_SIZE ** 0.5
    lim2 = 1.0 / HIDDEN ** 0.5
    w1 = jax.random.uniform(k1, (OBS_SIZE, HIDDEN), jnp.float32, -lim1, lim1)
    b1 = jax.random.uniform(kb1, (HIDDEN,), jnp.float32, -lim1, lim1)
    w2 = jax.random.uniform(k2, (HIDDEN, AC_SIZE), jnp.float32, -lim2, lim2)
    b2 = jax.random.uniform(kb2, (AC_SIZE,), jnp.float32, -lim2, lim2)

    # Exercise the Pallas path with a small tile so the grid has 2 steps.
    out = simple_mlp(x, w1, b1, w2, b2, tile_b=128, use_pallas=True)
    jax.block_until_ready(out)

    ref = reference_mlp(x, w1, b1, w2, b2)
    assert out.shape == (B, AC_SIZE)
    assert jnp.allclose(out, ref, atol=1e-5, rtol=1e-5)

    # Tiny-batch dispatch (B=8) falls back to plain XLA: overhead > work.
    out_small = simple_mlp(x[:8], w1, b1, w2, b2)
    jax.block_until_ready(out_small)
    assert out_small.shape == (8, AC_SIZE)
    assert jnp.allclose(out_small, ref[:8], atol=1e-5, rtol=1e-5)

    print("KERNEL_OK")
</pallas_src>

<mosaic_0001>
module attributes {stable_mosaic.version = 11 : i64} {
  func.func @mlp_kernel(%arg0: i32, %arg1: memref<17x128xf32, #tpu.memory_space<vmem>>, %arg2: memref<68xf32, #tpu.memory_space<smem>>, %arg3: memref<4xf32, #tpu.memory_space<smem>>, %arg4: memref<16xf32, #tpu.memory_space<smem>>, %arg5: memref<4xf32, #tpu.memory_space<smem>>, %arg6: memref<4x128xf32, #tpu.memory_space<vmem>>) attributes {dimension_semantics = [#tpu.dimension_semantics<parallel>], iteration_bounds = array<i64: 2>, scalar_prefetch = 0 : i64, scratch_operands = 0 : i64, tpu.core_type = #tpu.core_type<tc>, window_params = [{transform_indices = @transform_0, window_bounds = array<i64: 17, 128>}, {transform_indices = @transform_1, window_bounds = array<i64: 68>}, {transform_indices = @transform_2, window_bounds = array<i64: 4>}, {transform_indices = @transform_3, window_bounds = array<i64: 16>}, {transform_indices = @transform_4, window_bounds = array<i64: 4>}, {transform_indices = @transform_5, window_bounds = array<i64: 4, 128>}]} {
    %c0 = arith.constant 0 : index
    %c0_0 = arith.constant 0 : index
    %0 = vector.load %arg1[%c0, %c0_0] : memref<17x128xf32, #tpu.memory_space<vmem>>, vector<1x128xf32>
    %c1 = arith.constant 1 : index
    %c0_1 = arith.constant 0 : index
    %1 = vector.load %arg1[%c1, %c0_1] : memref<17x128xf32, #tpu.memory_space<vmem>>, vector<1x128xf32>
    %c2 = arith.constant 2 : index
    %c0_2 = arith.constant 0 : index
    %2 = vector.load %arg1[%c2, %c0_2] : memref<17x128xf32, #tpu.memory_space<vmem>>, vector<1x128xf32>
    %c3 = arith.constant 3 : index
    %c0_3 = arith.constant 0 : index
    %3 = vector.load %arg1[%c3, %c0_3] : memref<17x128xf32, #tpu.memory_space<vmem>>, vector<1x128xf32>
    %c4 = arith.constant 4 : index
    %c0_4 = arith.constant 0 : index
    %4 = vector.load %arg1[%c4, %c0_4] : memref<17x128xf32, #tpu.memory_space<vmem>>, vector<1x128xf32>
    %c5 = arith.constant 5 : index
    %c0_5 = arith.constant 0 : index
    %5 = vector.load %arg1[%c5, %c0_5] : memref<17x128xf32, #tpu.memory_space<vmem>>, vector<1x128xf32>
    %c6 = arith.constant 6 : index
    %c0_6 = arith.constant 0 : index
    %6 = vector.load %arg1[%c6, %c0_6] : memref<17x128xf32, #tpu.memory_space<vmem>>, vector<1x128xf32>
    %c7 = arith.constant 7 : index
    %c0_7 = arith.constant 0 : index
    %7 = vector.load %arg1[%c7, %c0_7] : memref<17x128xf32, #tpu.memory_space<vmem>>, vector<1x128xf32>
    %c8 = arith.constant 8 : index
    %c0_8 = arith.constant 0 : index
    %8 = vector.load %arg1[%c8, %c0_8] : memref<17x128xf32, #tpu.memory_space<vmem>>, vector<1x128xf32>
    %c9 = arith.constant 9 : index
    %c0_9 = arith.constant 0 : index
    %9 = vector.load %arg1[%c9, %c0_9] : memref<17x128xf32, #tpu.memory_space<vmem>>, vector<1x128xf32>
    %c10 = arith.constant 10 : index
    %c0_10 = arith.constant 0 : index
    %10 = vector.load %arg1[%c10, %c0_10] : memref<17x128xf32, #tpu.memory_space<vmem>>, vector<1x128xf32>
    %c11 = arith.constant 11 : index
    %c0_11 = arith.constant 0 : index
    %11 = vector.load %arg1[%c11, %c0_11] : memref<17x128xf32, #tpu.memory_space<vmem>>, vector<1x128xf32>
    %c12 = arith.constant 12 : index
    %c0_12 = arith.constant 0 : index
    %12 = vector.load %arg1[%c12, %c0_12] : memref<17x128xf32, #tpu.memory_space<vmem>>, vector<1x128xf32>
    %c13 = arith.constant 13 : index
    %c0_13 = arith.constant 0 : index
    %13 = vector.load %arg1[%c13, %c0_13] : memref<17x128xf32, #tpu.memory_space<vmem>>, vector<1x128xf32>
    %c14 = arith.constant 14 : index
    %c0_14 = arith.constant 0 : index
    %14 = vector.load %arg1[%c14, %c0_14] : memref<17x128xf32, #tpu.memory_space<vmem>>, vector<1x128xf32>
    %c15 = arith.constant 15 : index
    %c0_15 = arith.constant 0 : index
    %15 = vector.load %arg1[%c15, %c0_15] : memref<17x128xf32, #tpu.memory_space<vmem>>, vector<1x128xf32>
    %c16 = arith.constant 16 : index
    %c0_16 = arith.constant 0 : index
    %16 = vector.load %arg1[%c16, %c0_16] : memref<17x128xf32, #tpu.memory_space<vmem>>, vector<1x128xf32>
    %c0_17 = arith.constant 0 : index
    %17 = memref.load %arg2[%c0_17] : memref<68xf32, #tpu.memory_space<smem>>
    %18 = vector.broadcast %17 : f32 to vector<1x128xf32>
    %19 = arith.mulf %0, %18 : vector<1x128xf32>
    %c0_18 = arith.constant 0 : index
    %20 = memref.load %arg3[%c0_18] : memref<4xf32, #tpu.memory_space<smem>>
    %21 = vector.broadcast %20 : f32 to vector<1x128xf32>
    %22 = arith.addf %19, %21 : vector<1x128xf32>
    %c4_19 = arith.constant 4 : index
    %23 = memref.load %arg2[%c4_19] : memref<68xf32, #tpu.memory_space<smem>>
    %24 = vector.broadcast %23 : f32 to vector<1x128xf32>
    %25 = arith.mulf %1, %24 : vector<1x128xf32>
    %26 = arith.addf %22, %25 : vector<1x128xf32>
    %c8_20 = arith.constant 8 : index
    %27 = memref.load %arg2[%c8_20] : memref<68xf32, #tpu.memory_space<smem>>
    %28 = vector.broadcast %27 : f32 to vector<1x128xf32>
    %29 = arith.mulf %2, %28 : vector<1x128xf32>
    %30 = arith.addf %26, %29 : vector<1x128xf32>
    %c12_21 = arith.constant 12 : index
    %31 = memref.load %arg2[%c12_21] : memref<68xf32, #tpu.memory_space<smem>>
    %32 = vector.broadcast %31 : f32 to vector<1x128xf32>
    %33 = arith.mulf %3, %32 : vector<1x128xf32>
    %34 = arith.addf %30, %33 : vector<1x128xf32>
    %c16_22 = arith.constant 16 : index
    %35 = memref.load %arg2[%c16_22] : memref<68xf32, #tpu.memory_space<smem>>
    %36 = vector.broadcast %35 : f32 to vector<1x128xf32>
    %37 = arith.mulf %4, %36 : vector<1x128xf32>
    %38 = arith.addf %34, %37 : vector<1x128xf32>
    %c20 = arith.constant 20 : index
    %39 = memref.load %arg2[%c20] : memref<68xf32, #tpu.memory_space<smem>>
    %40 = vector.broadcast %39 : f32 to vector<1x128xf32>
    %41 = arith.mulf %5, %40 : vector<1x128xf32>
    %42 = arith.addf %38, %41 : vector<1x128xf32>
    %c24 = arith.constant 24 : index
    %43 = memref.load %arg2[%c24] : memref<68xf32, #tpu.memory_space<smem>>
    %44 = vector.broadcast %43 : f32 to vector<1x128xf32>
    %45 = arith.mulf %6, %44 : vector<1x128xf32>
    %46 = arith.addf %42, %45 : vector<1x128xf32>
    %c28 = arith.constant 28 : index
    %47 = memref.load %arg2[%c28] : memref<68xf32, #tpu.memory_space<smem>>
    %48 = vector.broadcast %47 : f32 to vector<1x128xf32>
    %49 = arith.mulf %7, %48 : vector<1x128xf32>
    %50 = arith.addf %46, %49 : vector<1x128xf32>
    %c32 = arith.constant 32 : index
    %51 = memref.load %arg2[%c32] : memref<68xf32, #tpu.memory_space<smem>>
    %52 = vector.broadcast %51 : f32 to vector<1x128xf32>
    %53 = arith.mulf %8, %52 : vector<1x128xf32>
    %54 = arith.addf %50, %53 : vector<1x128xf32>
    %c36 = arith.constant 36 : index
    %55 = memref.load %arg2[%c36] : memref<68xf32, #tpu.memory_space<smem>>
    %56 = vector.broadcast %55 : f32 to vector<1x128xf32>
    %57 = arith.mulf %9, %56 : vector<1x128xf32>
    %58 = arith.addf %54, %57 : vector<1x128xf32>
    %c40 = arith.constant 40 : index
    %59 = memref.load %arg2[%c40] : memref<68xf32, #tpu.memory_space<smem>>
    %60 = vector.broadcast %59 : f32 to vector<1x128xf32>
    %61 = arith.mulf %10, %60 : vector<1x128xf32>
    %62 = arith.addf %58, %61 : vector<1x128xf32>
    %c44 = arith.constant 44 : index
    %63 = memref.load %arg2[%c44] : memref<68xf32, #tpu.memory_space<smem>>
    %64 = vector.broadcast %63 : f32 to vector<1x128xf32>
    %65 = arith.mulf %11, %64 : vector<1x128xf32>
    %66 = arith.addf %62, %65 : vector<1x128xf32>
    %c48 = arith.constant 48 : index
    %67 = memref.load %arg2[%c48] : memref<68xf32, #tpu.memory_space<smem>>
    %68 = vector.broadcast %67 : f32 to vector<1x128xf32>
    %69 = arith.mulf %12, %68 : vector<1x128xf32>
    %70 = arith.addf %66, %69 : vector<1x128xf32>
    %c52 = arith.constant 52 : index
    %71 = memref.load %arg2[%c52] : memref<68xf32, #tpu.memory_space<smem>>
    %72 = vector.broadcast %71 : f32 to vector<1x128xf32>
    %73 = arith.mulf %13, %72 : vector<1x128xf32>
    %74 = arith.addf %70, %73 : vector<1x128xf32>
    %c56 = arith.constant 56 : index
    %75 = memref.load %arg2[%c56] : memref<68xf32, #tpu.memory_space<smem>>
    %76 = vector.broadcast %75 : f32 to vector<1x128xf32>
    %77 = arith.mulf %14, %76 : vector<1x128xf32>
    %78 = arith.addf %74, %77 : vector<1x128xf32>
    %c60 = arith.constant 60 : index
    %79 = memref.load %arg2[%c60] : memref<68xf32, #tpu.memory_space<smem>>
    %80 = vector.broadcast %79 : f32 to vector<1x128xf32>
    %81 = arith.mulf %15, %80 : vector<1x128xf32>
    %82 = arith.addf %78, %81 : vector<1x128xf32>
    %c64 = arith.constant 64 : index
    %83 = memref.load %arg2[%c64] : memref<68xf32, #tpu.memory_space<smem>>
    %84 = vector.broadcast %83 : f32 to vector<1x128xf32>
    %85 = arith.mulf %16, %84 : vector<1x128xf32>
    %86 = arith.addf %82, %85 : vector<1x128xf32>
    %87 = math.tanh %86 : vector<1x128xf32>
    %c1_23 = arith.constant 1 : index
    %88 = memref.load %arg2[%c1_23] : memref<68xf32, #tpu.memory_space<smem>>
    %89 = vector.broadcast %88 : f32 to vector<1x128xf32>
    %90 = arith.mulf %0, %89 : vector<1x128xf32>
    %c1_24 = arith.constant 1 : index
    %91 = memref.load %arg3[%c1_24] : memref<4xf32, #tpu.memory_space<smem>>
    %92 = vector.broadcast %91 : f32 to vector<1x128xf32>
    %93 = arith.addf %90, %92 : vector<1x128xf32>
    %c5_25 = arith.constant 5 : index
    %94 = memref.load %arg2[%c5_25] : memref<68xf32, #tpu.memory_space<smem>>
    %95 = vector.broadcast %94 : f32 to vector<1x128xf32>
    %96 = arith.mulf %1, %95 : vector<1x128xf32>
    %97 = arith.addf %93, %96 : vector<1x128xf32>
    %c9_26 = arith.constant 9 : index
    %98 = memref.load %arg2[%c9_26] : memref<68xf32, #tpu.memory_space<smem>>
    %99 = vector.broadcast %98 : f32 to vector<1x128xf32>
    %100 = arith.mulf %2, %99 : vector<1x128xf32>
    %101 = arith.addf %97, %100 : vector<1x128xf32>
    %c13_27 = arith.constant 13 : index
    %102 = memref.load %arg2[%c13_27] : memref<68xf32, #tpu.memory_space<smem>>
    %103 = vector.broadcast %102 : f32 to vector<1x128xf32>
    %104 = arith.mulf %3, %103 : vector<1x128xf32>
    %105 = arith.addf %101, %104 : vector<1x128xf32>
    %c17 = arith.constant 17 : index
    %106 = memref.load %arg2[%c17] : memref<68xf32, #tpu.memory_space<smem>>
    %107 = vector.broadcast %106 : f32 to vector<1x128xf32>
    %108 = arith.mulf %4, %107 : vector<1x128xf32>
    %109 = arith.addf %105, %108 : vector<1x128xf32>
    %c21 = arith.constant 21 : index
    %110 = memref.load %arg2[%c21] : memref<68xf32, #tpu.memory_space<smem>>
    %111 = vector.broadcast %110 : f32 to vector<1x128xf32>
    %112 = arith.mulf %5, %111 : vector<1x128xf32>
    %113 = arith.addf %109, %112 : vector<1x128xf32>
    %c25 = arith.constant 25 : index
    %114 = memref.load %arg2[%c25] : memref<68xf32, #tpu.memory_space<smem>>
    %115 = vector.broadcast %114 : f32 to vector<1x128xf32>
    %116 = arith.mulf %6, %115 : vector<1x128xf32>
    %117 = arith.addf %113, %116 : vector<1x128xf32>
    %c29 = arith.constant 29 : index
    %118 = memref.load %arg2[%c29] : memref<68xf32, #tpu.memory_space<smem>>
    %119 = vector.broadcast %118 : f32 to vector<1x128xf32>
    %120 = arith.mulf %7, %119 : vector<1x128xf32>
    %121 = arith.addf %117, %120 : vector<1x128xf32>
    %c33 = arith.constant 33 : index
    %122 = memref.load %arg2[%c33] : memref<68xf32, #tpu.memory_space<smem>>
    %123 = vector.broadcast %122 : f32 to vector<1x128xf32>
    %124 = arith.mulf %8, %123 : vector<1x128xf32>
    %125 = arith.addf %121, %124 : vector<1x128xf32>
    %c37 = arith.constant 37 : index
    %126 = memref.load %arg2[%c37] : memref<68xf32, #tpu.memory_space<smem>>
    %127 = vector.broadcast %126 : f32 to vector<1x128xf32>
    %128 = arith.mulf %9, %127 : vector<1x128xf32>
    %129 = arith.addf %125, %128 : vector<1x128xf32>
    %c41 = arith.constant 41 : index
    %130 = memref.load %arg2[%c41] : memref<68xf32, #tpu.memory_space<smem>>
    %131 = vector.broadcast %130 : f32 to vector<1x128xf32>
    %132 = arith.mulf %10, %131 : vector<1x128xf32>
    %133 = arith.addf %129, %132 : vector<1x128xf32>
    %c45 = arith.constant 45 : index
    %134 = memref.load %arg2[%c45] : memref<68xf32, #tpu.memory_space<smem>>
    %135 = vector.broadcast %134 : f32 to vector<1x128xf32>
    %136 = arith.mulf %11, %135 : vector<1x128xf32>
    %137 = arith.addf %133, %136 : vector<1x128xf32>
    %c49 = arith.constant 49 : index
    %138 = memref.load %arg2[%c49] : memref<68xf32, #tpu.memory_space<smem>>
    %139 = vector.broadcast %138 : f32 to vector<1x128xf32>
    %140 = arith.mulf %12, %139 : vector<1x128xf32>
    %141 = arith.addf %137, %140 : vector<1x128xf32>
    %c53 = arith.constant 53 : index
    %142 = memref.load %arg2[%c53] : memref<68xf32, #tpu.memory_space<smem>>
    %143 = vector.broadcast %142 : f32 to vector<1x128xf32>
    %144 = arith.mulf %13, %143 : vector<1x128xf32>
    %145 = arith.addf %141, %144 : vector<1x128xf32>
    %c57 = arith.constant 57 : index
    %146 = memref.load %arg2[%c57] : memref<68xf32, #tpu.memory_space<smem>>
    %147 = vector.broadcast %146 : f32 to vector<1x128xf32>
    %148 = arith.mulf %14, %147 : vector<1x128xf32>
    %149 = arith.addf %145, %148 : vector<1x128xf32>
    %c61 = arith.constant 61 : index
    %150 = memref.load %arg2[%c61] : memref<68xf32, #tpu.memory_space<smem>>
    %151 = vector.broadcast %150 : f32 to vector<1x128xf32>
    %152 = arith.mulf %15, %151 : vector<1x128xf32>
    %153 = arith.addf %149, %152 : vector<1x128xf32>
    %c65 = arith.constant 65 : index
    %154 = memref.load %arg2[%c65] : memref<68xf32, #tpu.memory_space<smem>>
    %155 = vector.broadcast %154 : f32 to vector<1x128xf32>
    %156 = arith.mulf %16, %155 : vector<1x128xf32>
    %157 = arith.addf %153, %156 : vector<1x128xf32>
    %158 = math.tanh %157 : vector<1x128xf32>
    %c2_28 = arith.constant 2 : index
    %159 = memref.load %arg2[%c2_28] : memref<68xf32, #tpu.memory_space<smem>>
    %160 = vector.broadcast %159 : f32 to vector<1x128xf32>
    %161 = arith.mulf %0, %160 : vector<1x128xf32>
    %c2_29 = arith.constant 2 : index
    %162 = memref.load %arg3[%c2_29] : memref<4xf32, #tpu.memory_space<smem>>
    %163 = vector.broadcast %162 : f32 to vector<1x128xf32>
    %164 = arith.addf %161, %163 : vector<1x128xf32>
    %c6_30 = arith.constant 6 : index
    %165 = memref.load %arg2[%c6_30] : memref<68xf32, #tpu.memory_space<smem>>
    %166 = vector.broadcast %165 : f32 to vector<1x128xf32>
    %167 = arith.mulf %1, %166 : vector<1x128xf32>
    %168 = arith.addf %164, %167 : vector<1x128xf32>
    %c10_31 = arith.constant 10 : index
    %169 = memref.load %arg2[%c10_31] : memref<68xf32, #tpu.memory_space<smem>>
    %170 = vector.broadcast %169 : f32 to vector<1x128xf32>
    %171 = arith.mulf %2, %170 : vector<1x128xf32>
    %172 = arith.addf %168, %171 : vector<1x128xf32>
    %c14_32 = arith.constant 14 : index
    %173 = memref.load %arg2[%c14_32] : memref<68xf32, #tpu.memory_space<smem>>
    %174 = vector.broadcast %173 : f32 to vector<1x128xf32>
    %175 = arith.mulf %3, %174 : vector<1x128xf32>
    %176 = arith.addf %172, %175 : vector<1x128xf32>
    %c18 = arith.constant 18 : index
    %177 = memref.load %arg2[%c18] : memref<68xf32, #tpu.memory_space<smem>>
    %178 = vector.broadcast %177 : f32 to vector<1x128xf32>
    %179 = arith.mulf %4, %178 : vector<1x128xf32>
    %180 = arith.addf %176, %179 : vector<1x128xf32>
    %c22 = arith.constant 22 : index
    %181 = memref.load %arg2[%c22] : memref<68xf32, #tpu.memory_space<smem>>
    %182 = vector.broadcast %181 : f32 to vector<1x128xf32>
    %183 = arith.mulf %5, %182 : vector<1x128xf32>
    %184 = arith.addf %180, %183 : vector<1x128xf32>
    %c26 = arith.constant 26 : index
    %185 = memref.load %arg2[%c26] : memref<68xf32, #tpu.memory_space<smem>>
    %186 = vector.broadcast %185 : f32 to vector<1x128xf32>
    %187 = arith.mulf %6, %186 : vector<1x128xf32>
    %188 = arith.addf %184, %187 : vector<1x128xf32>
    %c30 = arith.constant 30 : index
    %189 = memref.load %arg2[%c30] : memref<68xf32, #tpu.memory_space<smem>>
    %190 = vector.broadcast %189 : f32 to vector<1x128xf32>
    %191 = arith.mulf %7, %190 : vector<1x128xf32>
    %192 = arith.addf %188, %191 : vector<1x128xf32>
    %c34 = arith.constant 34 : index
    %193 = memref.load %arg2[%c34] : memref<68xf32, #tpu.memory_space<smem>>
    %194 = vector.broadcast %193 : f32 to vector<1x128xf32>
    %195 = arith.mulf %8, %194 : vector<1x128xf32>
    %196 = arith.addf %192, %195 : vector<1x128xf32>
    %c38 = arith.constant 38 : index
    %197 = memref.load %arg2[%c38] : memref<68xf32, #tpu.memory_space<smem>>
    %198 = vector.broadcast %197 : f32 to vector<1x128xf32>
    %199 = arith.mulf %9, %198 : vector<1x128xf32>
    %200 = arith.addf %196, %199 : vector<1x128xf32>
    %c42 = arith.constant 42 : index
    %201 = memref.load %arg2[%c42] : memref<68xf32, #tpu.memory_space<smem>>
    %202 = vector.broadcast %201 : f32 to vector<1x128xf32>
    %203 = arith.mulf %10, %202 : vector<1x128xf32>
    %204 = arith.addf %200, %203 : vector<1x128xf32>
    %c46 = arith.constant 46 : index
    %205 = memref.load %arg2[%c46] : memref<68xf32, #tpu.memory_space<smem>>
    %206 = vector.broadcast %205 : f32 to vector<1x128xf32>
    %207 = arith.mulf %11, %206 : vector<1x128xf32>
    %208 = arith.addf %204, %207 : vector<1x128xf32>
    %c50 = arith.constant 50 : index
    %209 = memref.load %arg2[%c50] : memref<68xf32, #tpu.memory_space<smem>>
    %210 = vector.broadcast %209 : f32 to vector<1x128xf32>
    %211 = arith.mulf %12, %210 : vector<1x128xf32>
    %212 = arith.addf %208, %211 : vector<1x128xf32>
    %c54 = arith.constant 54 : index
    %213 = memref.load %arg2[%c54] : memref<68xf32, #tpu.memory_space<smem>>
    %214 = vector.broadcast %213 : f32 to vector<1x128xf32>
    %215 = arith.mulf %13, %214 : vector<1x128xf32>
    %216 = arith.addf %212, %215 : vector<1x128xf32>
    %c58 = arith.constant 58 : index
    %217 = memref.load %arg2[%c58] : memref<68xf32, #tpu.memory_space<smem>>
    %218 = vector.broadcast %217 : f32 to vector<1x128xf32>
    %219 = arith.mulf %14, %218 : vector<1x128xf32>
    %220 = arith.addf %216, %219 : vector<1x128xf32>
    %c62 = arith.constant 62 : index
    %221 = memref.load %arg2[%c62] : memref<68xf32, #tpu.memory_space<smem>>
    %222 = vector.broadcast %221 : f32 to vector<1x128xf32>
    %223 = arith.mulf %15, %222 : vector<1x128xf32>
    %224 = arith.addf %220, %223 : vector<1x128xf32>
    %c66 = arith.constant 66 : index
    %225 = memref.load %arg2[%c66] : memref<68xf32, #tpu.memory_space<smem>>
    %226 = vector.broadcast %225 : f32 to vector<1x128xf32>
    %227 = arith.mulf %16, %226 : vector<1x128xf32>
    %228 = arith.addf %224, %227 : vector<1x128xf32>
    %229 = math.tanh %228 : vector<1x128xf32>
    %c3_33 = arith.constant 3 : index
    %230 = memref.load %arg2[%c3_33] : memref<68xf32, #tpu.memory_space<smem>>
    %231 = vector.broadcast %230 : f32 to vector<1x128xf32>
    %232 = arith.mulf %0, %231 : vector<1x128xf32>
    %c3_34 = arith.constant 3 : index
    %233 = memref.load %arg3[%c3_34] : memref<4xf32, #tpu.memory_space<smem>>
    %234 = vector.broadcast %233 : f32 to vector<1x128xf32>
    %235 = arith.addf %232, %234 : vector<1x128xf32>
    %c7_35 = arith.constant 7 : index
    %236 = memref.load %arg2[%c7_35] : memref<68xf32, #tpu.memory_space<smem>>
    %237 = vector.broadcast %236 : f32 to vector<1x128xf32>
    %238 = arith.mulf %1, %237 : vector<1x128xf32>
    %239 = arith.addf %235, %238 : vector<1x128xf32>
    %c11_36 = arith.constant 11 : index
    %240 = memref.load %arg2[%c11_36] : memref<68xf32, #tpu.memory_space<smem>>
    %241 = vector.broadcast %240 : f32 to vector<1x128xf32>
    %242 = arith.mulf %2, %241 : vector<1x128xf32>
    %243 = arith.addf %239, %242 : vector<1x128xf32>
    %c15_37 = arith.constant 15 : index
    %244 = memref.load %arg2[%c15_37] : memref<68xf32, #tpu.memory_space<smem>>
    %245 = vector.broadcast %244 : f32 to vector<1x128xf32>
    %246 = arith.mulf %3, %245 : vector<1x128xf32>
    %247 = arith.addf %243, %246 : vector<1x128xf32>
    %c19 = arith.constant 19 : index
    %248 = memref.load %arg2[%c19] : memref<68xf32, #tpu.memory_space<smem>>
    %249 = vector.broadcast %248 : f32 to vector<1x128xf32>
    %250 = arith.mulf %4, %249 : vector<1x128xf32>
    %251 = arith.addf %247, %250 : vector<1x128xf32>
    %c23 = arith.constant 23 : index
    %252 = memref.load %arg2[%c23] : memref<68xf32, #tpu.memory_space<smem>>
    %253 = vector.broadcast %252 : f32 to vector<1x128xf32>
    %254 = arith.mulf %5, %253 : vector<1x128xf32>
    %255 = arith.addf %251, %254 : vector<1x128xf32>
    %c27 = arith.constant 27 : index
    %256 = memref.load %arg2[%c27] : memref<68xf32, #tpu.memory_space<smem>>
    %257 = vector.broadcast %256 : f32 to vector<1x128xf32>
    %258 = arith.mulf %6, %257 : vector<1x128xf32>
    %259 = arith.addf %255, %258 : vector<1x128xf32>
    %c31 = arith.constant 31 : index
    %260 = memref.load %arg2[%c31] : memref<68xf32, #tpu.memory_space<smem>>
    %261 = vector.broadcast %260 : f32 to vector<1x128xf32>
    %262 = arith.mulf %7, %261 : vector<1x128xf32>
    %263 = arith.addf %259, %262 : vector<1x128xf32>
    %c35 = arith.constant 35 : index
    %264 = memref.load %arg2[%c35] : memref<68xf32, #tpu.memory_space<smem>>
    %265 = vector.broadcast %264 : f32 to vector<1x128xf32>
    %266 = arith.mulf %8, %265 : vector<1x128xf32>
    %267 = arith.addf %263, %266 : vector<1x128xf32>
    %c39 = arith.constant 39 : index
    %268 = memref.load %arg2[%c39] : memref<68xf32, #tpu.memory_space<smem>>
    %269 = vector.broadcast %268 : f32 to vector<1x128xf32>
    %270 = arith.mulf %9, %269 : vector<1x128xf32>
    %271 = arith.addf %267, %270 : vector<1x128xf32>
    %c43 = arith.constant 43 : index
    %272 = memref.load %arg2[%c43] : memref<68xf32, #tpu.memory_space<smem>>
    %273 = vector.broadcast %272 : f32 to vector<1x128xf32>
    %274 = arith.mulf %10, %273 : vector<1x128xf32>
    %275 = arith.addf %271, %274 : vector<1x128xf32>
    %c47 = arith.constant 47 : index
    %276 = memref.load %arg2[%c47] : memref<68xf32, #tpu.memory_space<smem>>
    %277 = vector.broadcast %276 : f32 to vector<1x128xf32>
    %278 = arith.mulf %11, %277 : vector<1x128xf32>
    %279 = arith.addf %275, %278 : vector<1x128xf32>
    %c51 = arith.constant 51 : index
    %280 = memref.load %arg2[%c51] : memref<68xf32, #tpu.memory_space<smem>>
    %281 = vector.broadcast %280 : f32 to vector<1x128xf32>
    %282 = arith.mulf %12, %281 : vector<1x128xf32>
    %283 = arith.addf %279, %282 : vector<1x128xf32>
    %c55 = arith.constant 55 : index
    %284 = memref.load %arg2[%c55] : memref<68xf32, #tpu.memory_space<smem>>
    %285 = vector.broadcast %284 : f32 to vector<1x128xf32>
    %286 = arith.mulf %13, %285 : vector<1x128xf32>
    %287 = arith.addf %283, %286 : vector<1x128xf32>
    %c59 = arith.constant 59 : index
    %288 = memref.load %arg2[%c59] : memref<68xf32, #tpu.memory_space<smem>>
    %289 = vector.broadcast %288 : f32 to vector<1x128xf32>
    %290 = arith.mulf %14, %289 : vector<1x128xf32>
    %291 = arith.addf %287, %290 : vector<1x128xf32>
    %c63 = arith.constant 63 : index
    %292 = memref.load %arg2[%c63] : memref<68xf32, #tpu.memory_space<smem>>
    %293 = vector.broadcast %292 : f32 to vector<1x128xf32>
    %294 = arith.mulf %15, %293 : vector<1x128xf32>
    %295 = arith.addf %291, %294 : vector<1x128xf32>
    %c67 = arith.constant 67 : index
    %296 = memref.load %arg2[%c67] : memref<68xf32, #tpu.memory_space<smem>>
    %297 = vector.broadcast %296 : f32 to vector<1x128xf32>
    %298 = arith.mulf %16, %297 : vector<1x128xf32>
    %299 = arith.addf %295, %298 : vector<1x128xf32>
    %300 = math.tanh %299 : vector<1x128xf32>
    %c0_38 = arith.constant 0 : index
    %301 = memref.load %arg4[%c0_38] : memref<16xf32, #tpu.memory_space<smem>>
    %302 = vector.broadcast %301 : f32 to vector<1x128xf32>
    %303 = arith.mulf %87, %302 : vector<1x128xf32>
    %c0_39 = arith.constant 0 : index
    %304 = memref.load %arg5[%c0_39] : memref<4xf32, #tpu.memory_space<smem>>
    %305 = vector.broadcast %304 : f32 to vector<1x128xf32>
    %306 = arith.addf %303, %305 : vector<1x128xf32>
    %c4_40 = arith.constant 4 : index
    %307 = memref.load %arg4[%c4_40] : memref<16xf32, #tpu.memory_space<smem>>
    %308 = vector.broadcast %307 : f32 to vector<1x128xf32>
    %309 = arith.mulf %158, %308 : vector<1x128xf32>
    %310 = arith.addf %306, %309 : vector<1x128xf32>
    %c8_41 = arith.constant 8 : index
    %311 = memref.load %arg4[%c8_41] : memref<16xf32, #tpu.memory_space<smem>>
    %312 = vector.broadcast %311 : f32 to vector<1x128xf32>
    %313 = arith.mulf %229, %312 : vector<1x128xf32>
    %314 = arith.addf %310, %313 : vector<1x128xf32>
    %c12_42 = arith.constant 12 : index
    %315 = memref.load %arg4[%c12_42] : memref<16xf32, #tpu.memory_space<smem>>
    %316 = vector.broadcast %315 : f32 to vector<1x128xf32>
    %317 = arith.mulf %300, %316 : vector<1x128xf32>
    %318 = arith.addf %314, %317 : vector<1x128xf32>
    %319 = math.tanh %318 : vector<1x128xf32>
    %c0_43 = arith.constant 0 : index
    %c0_44 = arith.constant 0 : index
    %320 = vector.load %arg6[%c0_43, %c0_44] : memref<4x128xf32, #tpu.memory_space<vmem>>, vector<1x128xf32>
    tpu.vector_store %arg6[%c0_43, %c0_44], %319 {strides = array<i32>} : memref<4x128xf32, #tpu.memory_space<vmem>>, vector<1x128xf32>,
    %c1_45 = arith.constant 1 : index
    %321 = memref.load %arg4[%c1_45] : memref<16xf32, #tpu.memory_space<smem>>
    %322 = vector.broadcast %321 : f32 to vector<1x128xf32>
    %323 = arith.mulf %87, %322 : vector<1x128xf32>
    %c1_46 = arith.constant 1 : index
    %324 = memref.load %arg5[%c1_46] : memref<4xf32, #tpu.memory_space<smem>>
    %325 = vector.broadcast %324 : f32 to vector<1x128xf32>
    %326 = arith.addf %323, %325 : vector<1x128xf32>
    %c5_47 = arith.constant 5 : index
    %327 = memref.load %arg4[%c5_47] : memref<16xf32, #tpu.memory_space<smem>>
    %328 = vector.broadcast %327 : f32 to vector<1x128xf32>
    %329 = arith.mulf %158, %328 : vector<1x128xf32>
    %330 = arith.addf %326, %329 : vector<1x128xf32>
    %c9_48 = arith.constant 9 : index
    %331 = memref.load %arg4[%c9_48] : memref<16xf32, #tpu.memory_space<smem>>
    %332 = vector.broadcast %331 : f32 to vector<1x128xf32>
    %333 = arith.mulf %229, %332 : vector<1x128xf32>
    %334 = arith.addf %330, %333 : vector<1x128xf32>
    %c13_49 = arith.constant 13 : index
    %335 = memref.load %arg4[%c13_49] : memref<16xf32, #tpu.memory_space<smem>>
    %336 = vector.broadcast %335 : f32 to vector<1x128xf32>
    %337 = arith.mulf %300, %336 : vector<1x128xf32>
    %338 = arith.addf %334, %337 : vector<1x128xf32>
    %339 = math.tanh %338 : vector<1x128xf32>
    %c1_50 = arith.constant 1 : index
    %c0_51 = arith.constant 0 : index
    %340 = vector.load %arg6[%c1_50, %c0_51] : memref<4x128xf32, #tpu.memory_space<vmem>>, vector<1x128xf32>
    tpu.vector_store %arg6[%c1_50, %c0_51], %339 {strides = array<i32>} : memref<4x128xf32, #tpu.memory_space<vmem>>, vector<1x128xf32>,
    %c2_52 = arith.constant 2 : index
    %341 = memref.load %arg4[%c2_52] : memref<16xf32, #tpu.memory_space<smem>>
    %342 = vector.broadcast %341 : f32 to vector<1x128xf32>
    %343 = arith.mulf %87, %342 : vector<1x128xf32>
    %c2_53 = arith.constant 2 : index
    %344 = memref.load %arg5[%c2_53] : memref<4xf32, #tpu.memory_space<smem>>
    %345 = vector.broadcast %344 : f32 to vector<1x128xf32>
    %346 = arith.addf %343, %345 : vector<1x128xf32>
    %c6_54 = arith.constant 6 : index
    %347 = memref.load %arg4[%c6_54] : memref<16xf32, #tpu.memory_space<smem>>
    %348 = vector.broadcast %347 : f32 to vector<1x128xf32>
    %349 = arith.mulf %158, %348 : vector<1x128xf32>
    %350 = arith.addf %346, %349 : vector<1x128xf32>
    %c10_55 = arith.constant 10 : index
    %351 = memref.load %arg4[%c10_55] : memref<16xf32, #tpu.memory_space<smem>>
    %352 = vector.broadcast %351 : f32 to vector<1x128xf32>
    %353 = arith.mulf %229, %352 : vector<1x128xf32>
    %354 = arith.addf %350, %353 : vector<1x128xf32>
    %c14_56 = arith.constant 14 : index
    %355 = memref.load %arg4[%c14_56] : memref<16xf32, #tpu.memory_space<smem>>
    %356 = vector.broadcast %355 : f32 to vector<1x128xf32>
    %357 = arith.mulf %300, %356 : vector<1x128xf32>
    %358 = arith.addf %354, %357 : vector<1x128xf32>
    %359 = math.tanh %358 : vector<1x128xf32>
    %c2_57 = arith.constant 2 : index
    %c0_58 = arith.constant 0 : index
    %360 = vector.load %arg6[%c2_57, %c0_58] : memref<4x128xf32, #tpu.memory_space<vmem>>, vector<1x128xf32>
    tpu.vector_store %arg6[%c2_57, %c0_58], %359 {strides = array<i32>} : memref<4x128xf32, #tpu.memory_space<vmem>>, vector<1x128xf32>,
    %c3_59 = arith.constant 3 : index
    %361 = memref.load %arg4[%c3_59] : memref<16xf32, #tpu.memory_space<smem>>
    %362 = vector.broadcast %361 : f32 to vector<1x128xf32>
    %363 = arith.mulf %87, %362 : vector<1x128xf32>
    %c3_60 = arith.constant 3 : index
    %364 = memref.load %arg5[%c3_60] : memref<4xf32, #tpu.memory_space<smem>>
    %365 = vector.broadcast %364 : f32 to vector<1x128xf32>
    %366 = arith.addf %363, %365 : vector<1x128xf32>
    %c7_61 = arith.constant 7 : index
    %367 = memref.load %arg4[%c7_61] : memref<16xf32, #tpu.memory_space<smem>>
    %368 = vector.broadcast %367 : f32 to vector<1x128xf32>
    %369 = arith.mulf %158, %368 : vector<1x128xf32>
    %370 = arith.addf %366, %369 : vector<1x128xf32>
    %c11_62 = arith.constant 11 : index
    %371 = memref.load %arg4[%c11_62] : memref<16xf32, #tpu.memory_space<smem>>
    %372 = vector.broadcast %371 : f32 to vector<1x128xf32>
    %373 = arith.mulf %229, %372 : vector<1x128xf32>
    %374 = arith.addf %370, %373 : vector<1x128xf32>
    %c15_63 = arith.constant 15 : index
    %375 = memref.load %arg4[%c15_63] : memref<16xf32, #tpu.memory_space<smem>>
    %376 = vector.broadcast %375 : f32 to vector<1x128xf32>
    %377 = arith.mulf %300, %376 : vector<1x128xf32>
    %378 = arith.addf %374, %377 : vector<1x128xf32>
    %379 = math.tanh %378 : vector<1x128xf32>
    %c3_64 = arith.constant 3 : index
    %c0_65 = arith.constant 0 : index
    %380 = vector.load %arg6[%c3_64, %c0_65] : memref<4x128xf32, #tpu.memory_space<vmem>>, vector<1x128xf32>
    tpu.vector_store %arg6[%c3_64, %c0_65], %379 {strides = array<i32>} : memref<4x128xf32, #tpu.memory_space<vmem>>, vector<1x128xf32>,
    return
  }
  func.func @transform_0(%arg0: i32) -> (i32, i32) {
    %c0_i32 = arith.constant 0 : i32
    %c0_i32_0 = arith.constant 0 : i32
    return %c0_i32, %arg0 : i32, i32
  }
  func.func @transform_1(%arg0: i32) -> i32 {
    %c0_i32 = arith.constant 0 : i32
    %c0_i32_0 = arith.constant 0 : i32
    return %c0_i32 : i32
  }
  func.func @transform_2(%arg0: i32) -> i32 {
    %c0_i32 = arith.constant 0 : i32
    %c0_i32_0 = arith.constant 0 : i32
    return %c0_i32 : i32
  }
  func.func @transform_3(%arg0: i32) -> i32 {
    %c0_i32 = arith.constant 0 : i32
    %c0_i32_0 = arith.constant 0 : i32
    return %c0_i32 : i32
  }
  func.func @transform_4(%arg0: i32) -> i32 {
    %c0_i32 = arith.constant 0 : i32
    %c0_i32_0 = arith.constant 0 : i32
    return %c0_i32 : i32
  }
  func.func @transform_5(%arg0: i32) -> (i32, i32) {
    %c0_i32 = arith.constant 0 : i32
    %c0_i32_0 = arith.constant 0 : i32
    return %c0_i32, %arg0 : i32, i32
  }
}

</mosaic_0001>

<bundles_post_ra>
// kernel: tpu_custom_call.1
= control target key start
LH: loop header
LB: loop body
LE: loop exit
PB: predicated region body
PF: predicated region fallthrough
CT: control target
= control target key end

     0   :  { %s1826_s0 = inlined_call_operand.hbm [shape: f32[17,256], index: 0, kind: input, shape index: {}]   ;;  %s1827_s1 = inlined_call_operand.vmem [shape: f32[68], index: 1, kind: input, shape index: {}]   ;;  %s1828_s2 = inlined_call_operand.vmem [shape: f32[4], index: 2, kind: input, shape index: {}]   ;;  %s1829_s3 = inlined_call_operand.vmem [shape: f32[16], index: 3, kind: input, shape index: {}]   ;;  %s1830_s4 = inlined_call_operand.vmem [shape: f32[4], index: 4, kind: input, shape index: {}]   ;;  %s1831_s5 = inlined_call_operand.hbm [shape: f32[4,256], index: 5, kind: output, shape index: {}]  }
   0x1   :  { %1835 = sst [smem:[#allocation18_spill]] %s1826_s0 }
   0x2   :  { %1836 = sst [smem:[#allocation19_spill]] %s1827_s1 }
   0x3   :  { %10 = vsyncpa [#allocation3], 0 }
   0x4   :  { %12 = vsyncpa [#allocation3 + $0x1], 0 }
   0x5   :  { %13 = vsyncpa [#allocation5], 0 }
   0x6   :  { %14 = vsyncpa [#allocation8], 0 }
   0x7   :  { %15 = vsyncpa [#allocation11], 0 }
   0x8   :  { %16 = vsyncpa [#allocation4], 0 }
   0x9   :  { %18 = vsyncpa [#allocation4 + $0x1], 0  ;;  %s1223_s18 = smov 0   ;;  %s1225_s19 = smov 0  }
   0xa   :  { %s1227_s20 = smov 0   ;;  %s1229_s21 = smov 0  }
   0xb LB: > { %s1244_s22 = sadd.s32 4294967295, %s1182_s21   ;;  %s800_s23 = sadd.s32 4294967294, %s1182_s21   ;;  %s1182_s21 = sphi %s1229_s21, %s1859_s21   ;;  %s1178_s20 = sphi %s1227_s20, %s1858_s20   ;;  %s1174_s19 = sphi %s1225_s19, %s1857_s19   ;;  %s1170_s18 = sphi %s1223_s18, %s1856_s18  }
   0xc   : > { %p44_p0 = scmp.ne.s32.totalorder %s1174_s19, %s1170_s18  ;;  %p1832_p1 = scmp.eq.s32.totalorder %s1244_s22, 0 }
   0xd   : > { %p158_p3 = scmp.eq.s32.totalorder %s800_s23, 1  ;;  %p801_p5 = scmp.ge.s32.totalorder %s1182_s21, 1 }
   0xe   : > { %p1253_p4 = por %p1832_p1, %p44_p0  ;;  %p165_p7 = scmp.lt.s32.totalorder %s1182_s21, 3 }
   0xf   : > { %p1258_p6 = por %p158_p3, %p44_p0  ;;  %s189_s28 = sshll.u32 %s1828_s2, 4  ;;  %s190_s28 = int_to_ptr.vmem [resolvable:$true] %s189_s28 }
  0x10   : > { %s1837_s24 = scalar_select %p1253_p4, 1, 0 }
  0x11   : > { %s1838_s25 = scalar_select %p1258_p6, 1, 0 }
  0x12   : > { %p1266_p8 = pnand %p801_p5, %p165_p7  ;;  %s1840_s1 = sld [smem:[#allocation19_spill]] }
  0x13   : > { %s200_s11 = sshll.u32 %s1829_s3, 4  ;;  %s211_s14 = sshll.u32 %s1830_s4, 4  ;;  %s1285_s11 = int_to_ptr.vmem [resolvable:$true] %s200_s11  ;;  %s212_s14 = int_to_ptr.vmem [resolvable:$true] %s211_s14 }
  0x14   : > { %s1839_s29 = scalar_select %p1266_p8, 1, 0 }
  0x15   : > { %p928_p10 = pneg %p1266_p8  ;;  %s1014_s15 = scalar_lea.vmem %s190_s28, 16 }
  0x16   : > { %p1015_p12 = scmp.ne.s32.totalorder %s190_s28, %s1014_s15  ;;  %p1022_p5 = scmp.lt.s32.totalorder %s190_s28, %s190_s28 }
  0x17   : > { %p1278_p11 = pnand %p928_p10, %p1832_p1  ;;  %p1023_p7 = scmp.lt.s32.totalorder %s1014_s15, %s1014_s15 }
  0x18   : > { %s178_s7 = sshll.u32 %s1840_s1, 4  ;;  %s179_s7 = int_to_ptr.vmem [resolvable:$true] %s178_s7 }
  0x19   : > { %p1016_p13 = pneg %p1278_p11  ;;  %p1024_p10 = por %p1023_p7, %p1022_p5 }
  0x1b   : > { %p1017_p0 = pnand %p1016_p13, %p1015_p12 }
  0x1d   : > { %p1018_p3 = pneg %p1017_p0 }
  0x1f   : > { %p1025_p9 = pnand %p1024_p10, %p1018_p3 }
  0x21   : > { %1028 = shalt.err (!%p1025_p9)
}
  0x22   : > { %s1184_s16 = smov [#allocation7]   ;;  %s1029_s17 = scalar_lea.vmem %s179_s7, 16 }
  0x23   : > { %934 = dma.vmem_to_smem (!%p1278_p11), %s190_s28, 16, %s1184_s16, [#allocation8]  }
  0x24   : > { %p1030_p1 = scmp.ne.s32.totalorder %s179_s7, %s1029_s17  ;;  %p1037_p4 = scmp.lt.s32.totalorder %s179_s7, %s179_s7 }
  0x25   : > { %p1038_p8 = scmp.lt.s32.totalorder %s1029_s17, %s1029_s17 }
  0x26   : > { %p1032_p2 = pnand %p1030_p1, %p1016_p13 }
  0x27   : > { %p1039_p12 = por %p1038_p8, %p1037_p4 }
  0x28   : > { %p1033_p6 = pneg %p1032_p2 }
  0x2a   : > { %p1040_p0 = pnand %p1039_p12, %p1033_p6 }
  0x2c   : > { %1043 = shalt.err (!%p1040_p0)
}
  0x2d   : > { %s1185_s23 = smov [#allocation6]   ;;  %s1044_s26 = scalar_lea.vmem %s1285_s11, 16 }
  0x2e   : > { %931 = dma.vmem_to_smem (!%p1278_p11), %s179_s7, 16, %s1185_s23, [#allocation5]  }
  0x2f   : > { %p1045_p9 = scmp.ne.s32.totalorder %s1285_s11, %s1044_s26  ;;  %p1052_p2 = scmp.lt.s32.totalorder %s1285_s11, %s1285_s11 }
  0x30   : > { %p1053_p5 = scmp.lt.s32.totalorder %s1044_s26, %s1044_s26 }
  0x31   : > { %p1047_p3 = pnand %p1045_p9, %p1016_p13 }
  0x32   : > { %p1054_p4 = por %p1053_p5, %p1052_p2 }
  0x33   : > { %p1048_p1 = pneg %p1047_p3 }
  0x35   : > { %p1055_p6 = pnand %p1054_p4, %p1048_p1 }
  0x37   : > { %1058 = shalt.err (!%p1055_p6)
}
  0x38   : > { %s1186_s27 = smov [#allocation9]   ;;  %s1059_s6 = scalar_lea.vmem %s212_s14, 16 }
  0x39   : > { %937 = dma.vmem_to_smem (!%p1278_p11), %s1285_s11, 16, %s1186_s27, [#allocation8]  }
  0x3a   : > { %p1060_p8 = scmp.ne.s32.totalorder %s212_s14, %s1059_s6  ;;  %p1067_p12 = scmp.lt.s32.totalorder %s212_s14, %s212_s14 }
  0x3b   : > { %p1068_p0 = scmp.lt.s32.totalorder %s1059_s6, %s1059_s6 }
  0x3c   : > { %p1062_p7 = pnand %p1060_p8, %p1016_p13 }
  0x3d   : > { %p1069_p9 = por %p1068_p0, %p1067_p12 }
  0x3e   : > { %p1063_p10 = pneg %p1062_p7 }
  0x40   : > { %p1070_p3 = pnand %p1069_p9, %p1063_p10 }
  0x42   : > { %1073 = shalt.err (!%p1070_p3)
}
  0x43   : > { %s1187_s7 = smov [#allocation10]   ;;  %s1322_s9 = sadd.s32 1, %s1182_s21  }
  0x44   : > { %940 = dma.vmem_to_smem (!%p1278_p11), %s212_s14, 16, %s1187_s7, [#allocation11]  }
  0x45   : > { %s28_s10 = ssub.s32 %s1182_s21, %s1322_s9  ;;  %s31_s11 = sadd.s32 1, %s1178_s20 }
  0x46   : > { %p29_p13 = scmp.eq.s32.totalorder %s28_s10, 0  ;;  %p38_p1 = scmp.ne.s32.totalorder %s1178_s20, %s1174_s19 }
  0x47   : > { %p39_p2 = scmp.eq.s32.totalorder %s1182_s21, 0  ;;  %p1842_p4 = scmp.eq.s32.totalorder %s1244_s22, 1 }
  0x48   : > { %s1331_s8 = scalar_select %p29_p13, %s1178_s20, %s31_s11  }
  0x49   : > { %p40_p5 = por %p39_p2, %p38_p1  ;;  %p1335_p6 = por %p1842_p4, %p38_p1 }
  0x4a   : > { %p953_p8 = scmp.lt.s32.totalorder %s1182_s21, 2  ;;  %s222_s13 = sand.u32 1, %s1178_s20  }
  0x4b   : > { %s906_s15 = smul.u32 24, %s222_s13  ;;  %s807_s14 = sshll.u32 %s1182_s21, 7 }
  0x4c   : > { %p1342_p11 = pnand %p953_p8, %p40_p5  ;;  %s1845_s0 = sld [smem:[#allocation18_spill]] }
  0x4d   : > { %s226_s27 = scalar_lea.vmem [#allocation2], %s906_s15  ;;  %s1353_s30 = scalar_lea.sflag [#allocation3], %s222_s13 }
  0x4e   : > { %s232_s28 = sshll.u32 %s226_s27, 4  ;;  %p1076_p10 = pneg %p1342_p11  ;;  %s1351_s28 = int_to_ptr.vmem [resolvable:$true] %s232_s28 }
  0x52   : > { %s1349_s26 = scalar_lea.hbm %s1845_s0, %s807_s14  ;;  %s1079_s11 = scalar_lea.hbm %s1845_s0, 768 }
  0x53   : > { %s1074_s6 = scalar_lea.hbm %s1349_s26, 384  ;;  %p1080_p9 = scmp.lt.u32.totalorder %s1349_s26, %s1845_s0 }
  0x54   : > { %p1075_p7 = scmp.ne.s32.totalorder %s1349_s26, %s1074_s6  ;;  %p1081_p3 = scmp.lt.u32.totalorder %s1079_s11, %s1074_s6 }
  0x55   : > { %p1083_p1 = scmp.lt.u32.totalorder %s1074_s6, %s1349_s26 }
  0x56   : > { %p1077_p12 = pnand %p1076_p10, %p1075_p7  ;;  %p1082_p13 = por %p1081_p3, %p1080_p9 }
  0x58   : > { %p1078_p0 = pneg %p1077_p12  ;;  %p1084_p2 = por %p1083_p1, %p1082_p13 }
  0x5a   : > { %p1085_p5 = pnand %p1084_p2, %p1078_p0 }
  0x5c   : > { %1088 = shalt.err (!%p1085_p5)
}
  0x5d   : > { %s1089_s13 = scalar_lea.vmem %s1351_s28, 384  ;;  %s1188_s15 = smov [#allocation2]  }
  0x5e   : > { %p1090_p4 = scmp.ne.s32.totalorder %s1351_s28, %s1089_s13  ;;  %s1094_s23 = sshll.u32 %s1188_s15, 4  ;;  %s1095_s23 = int_to_ptr.vmem [resolvable:$false] %s1094_s23 }
  0x5f   : > { %s1096_s27 = scalar_lea.vmem %s1095_s23, 768  ;;  %p1097_p12 = scmp.lt.s32.totalorder %s1351_s28, %s1095_s23 }
  0x60   : > { %p1092_p8 = pnand %p1090_p4, %p1076_p10  ;;  %p1098_p9 = scmp.lt.s32.totalorder %s1096_s27, %s1089_s13 }
  0x62   : > { %p1093_p7 = pneg %p1092_p8  ;;  %p1099_p3 = por %p1098_p9, %p1097_p12 }
  0x64   : > { %p1100_p13 = pnand %p1099_p3, %p1093_p7 }
  0x66   : > { %1103 = shalt.err (!%p1100_p13)
}
  0x67   : > { %s1189_s6 = smov 256   ;;  %s1190_s7 = smov 128  }
  0x68   : > { %s1191_s10 = smov 8   ;;  %p1846_p10 = scmp.ne.s32.totalorder %s1839_s29, 0 }
  0x69   : > { %944 = dma.hbm_to_vmem [thread:$0]  (!%p1342_p11), %s1349_s26, 384, %s1351_s28, %s1353_s30, %s1189_s6, %s1190_s7, %s1191_s10  }
  0x6a   : > { %244 = sbr.rel (%p1846_p10) target bundleno = 241 (0xf1), region = 40  ;;  %s1384_s11 = sand.u32 (!%p1846_p10), 1, %s1174_s19  }
  0x6b   : > { %s907_s14 = smul.u32 (!%p1846_p10), 24, %s1384_s11  ;;  %s247_s17 = scalar_lea.sflag (!%p1846_p10), [#allocation3], %s1384_s11 }
  0x6c   : > { %p1847_p0 = scmp.ne.s32.totalorder (!%p1846_p10), %s1837_s24, 0 }
  0x6d   : > { %s1388_s13 = scalar_lea.vmem (!%p1846_p10), [#allocation2], %s907_s14 }
  0x71   : > { %1149 = dma.done.wait (%p1847_p0), %s247_s17, 384  }
  0x72   : > { %1151 = vsyncadd (%p1847_p0), %s247_s17, 4294966912  ;;  %p1848_p11 = scmp.eq.s32.totalorder %s1244_s22, 0 }
  0x74   : > { %1153 = dma.done.wait (%p1848_p11), [#allocation5], 16   ;;  %p1849_p1 = pmov %p1848_p11 }
  0x76   : > { %1155 = vsyncadd (%p1849_p1), [#allocation5], 4294967280  ;;  %p1850_p2 = pmov %p1849_p1 }
  0x77   : > { %p1851_p5 = pmov %p1849_p1 }
  0x78   : > { %1157 = dma.done.wait (%p1850_p2), [#allocation8], 32  }
  0x79   : > { %1159 = vsyncadd (%p1851_p5), [#allocation8], 4294967264  ;;  %p1852_p4 = pmov %p1849_p1 }
  0x7a   : > { %p1853_p8 = pmov %p1849_p1 }
  0x7b   : > { %1161 = dma.done.wait (%p1852_p4), [#allocation11], 16  }
  0x7c   : > { %1163 = vsyncadd (%p1853_p8), [#allocation11], 4294967280 }
  0x7d   : > { %271 = sfence }
  0x7e   : > { %s311_s24 = sld [smem:[#allocation6]]  ;;  %s814_s16 = sld [smem:[#allocation6 + $0x4]]  ;;  %v1409_v0 = vld [vmem:[%s1388_s13] sm:$0x1]  ;;  %v1414_v1 = vld [vmem:[%s1388_s13 + $0x1] sm:$0x1] }
  0x7f   : > { %s314_s29 = sld [smem:[#allocation7]]  ;;  %s816_s28 = sld [smem:[#allocation6 + $0xc]]  ;;  %v1417_v2 = vld [vmem:[%s1388_s13 + $0x2] sm:$0x1]  ;;  %v1423_v8 = vld [vmem:[%s1388_s13 + $0x3] sm:$0x1] }
  0x80   : > { %s815_s26 = sld [smem:[#allocation6 + $0x8]]  ;;  %s1411_s15 = sld [smem:[#allocation6 + $0x14]]  ;;  %v1436_v13 = vld [vmem:[%s1388_s13 + $0x4] sm:$0x1]  ;;  %v1445_v17 = vld [vmem:[%s1388_s13 + $0x5] sm:$0x1] }
  0x81   : > { %s1406_s30 = sld [smem:[#allocation6 + $0x10]]  ;;  %s1426_s27 = sld [smem:[#allocation6 + $0x1c]]  ;;  %v1458_v21 = vld [vmem:[%s1388_s13 + $0x6] sm:$0x1]  ;;  %v1466_v23 = vld [vmem:[%s1388_s13 + $0x7] sm:$0x1] }
  0x82   : > { %s1419_s23 = sld [smem:[#allocation6 + $0x18]]  ;;  %s1431_s7 = sld [smem:[#allocation6 + $0x1]]  ;;  %v1480_v34 = vld [vmem:[%s1388_s13 + $0x8] sm:$0x1]  ;;  %v1492_v42 = vld [vmem:[%s1388_s13 + $0x9] sm:$0x1] }
  0x83   : > { %s1428_s6 = sld [smem:[#allocation6 + $0x20]]  ;;  %s1433_s10 = sld [smem:[#allocation7 + $0x1]]  ;;  %v1501_v45 = vld [vmem:[%s1388_s13 + $0xa] sm:$0x1]  ;;  %v1504_v46 = vld [vmem:[%s1388_s13 + $0xb] sm:$0x1] }
  0x84   : > { %v312_v3 = vstv %s311_s24  ;;  %v318_v6 = vstv %s814_s16  ;;  %s832_s14 = sld [smem:[#allocation6 + $0x5]]  ;;  %s1439_s17 = sld [smem:[#allocation6 + $0x9]]  ;;  %v1519_v55 = vld [vmem:[%s1388_s13 + $0xc] sm:$0x1] }
  0x85   : > { %v315_v4 = vstv %s314_s29  ;;  %v313_v5 = vmul.f32 %v312_v3, %v1409_v0  ;;  %v319_v9 = vmul.f32 %v318_v6, %v1414_v1  ;;  %v326_v10 = vstv %s816_s28  ;;  %s1442_s24 = sld [smem:[#allocation6 + $0xd]]  ;;  %s1448_s29 = sld [smem:[#allocation6 + $0x24]] }
  0x86   : > { %v322_v7 = vstv %s815_s26  ;;  %v327_v16 = vmul.f32 %v326_v10, %v1423_v8  ;;  %v334_v18 = vstv %s1411_s15  ;;  %s1450_s16 = sld [smem:[#allocation6 + $0x11]]  ;;  %s1453_s26 = sld [smem:[#allocation6 + $0x28]] }
  0x87   : > { %v316_v11 = vadd.f32 %v315_v4, %v313_v5  ;;  %v323_v12 = vmul.f32 %v322_v7, %v1417_v2  ;;  %v330_v14 = vstv %s1406_s30  ;;  %s1455_s28 = sld [smem:[#allocation6 + $0x2c]]  ;;  %s1461_s30 = sld [smem:[#allocation6 + $0x30]]  ;;  %v335_v25 = vmul.f32 %v334_v18, %v1445_v17 }
  0x88   : > { %v331_v20 = vmul.f32 %v330_v14, %v1436_v13  ;;  %v338_v22 = vstv %s1419_s23  ;;  %s1463_s15 = sld [smem:[#allocation6 + $0x15]]  ;;  %v342_v26 = vstv %s1426_s27  ;;  %v383_v27 = vstv %s1431_s7  ;;  %s1472_s0 = sld [smem:[#allocation6 + $0x19]] }
  0x89   : > { %v320_v15 = vadd.f32 %v319_v9, %v316_v11  ;;  %v386_v28 = vstv %s1433_s10  ;;  %s1474_s23 = sld [smem:[#allocation6 + $0x1d]]  ;;  %v339_v31 = vmul.f32 %v338_v22, %v1458_v21  ;;  %v384_v32 = vmul.f32 %v383_v27, %v1409_v0  ;;  %s1485_s27 = sld [smem:[#allocation6 + $0x2]] }
  0x8a   : > { %v389_v29 = vstv %s832_s14  ;;  %v346_v35 = vstv %s1428_s6  ;;  %v393_v36 = vstv %s1439_s17  ;;  %v343_v39 = vmul.f32 %v342_v26, %v1466_v23  ;;  %s1489_s7 = sld [smem:[#allocation6 + $0x21]]  ;;  %s1496_s6 = sld [smem:[#allocation7 + $0x2]] }
  0x8b   : > { %v324_v19 = vadd.f32 %v323_v12, %v320_v15  ;;  %v390_v33 = vmul.f32 %v389_v29, %v1414_v1  ;;  %v397_v37 = vstv %s1442_s24  ;;  %v387_v40 = vadd.f32 %v386_v28, %v384_v32  ;;  %s1498_s10 = sld [smem:[#allocation6 + $0x6]]  ;;  %s1508_s14 = sld [smem:[#allocation6 + $0xa]] }
  0x8c   : > { %v394_v41 = vmul.f32 %v393_v36, %v1417_v2  ;;  %v350_v43 = vstv %s1448_s29  ;;  %v401_v44 = vstv %s1450_s16  ;;  %v347_v48 = vmul.f32 %v346_v35, %v1480_v34  ;;  %s1514_s17 = sld [smem:[#allocation6 + $0x25]]  ;;  %s1516_s24 = sld [smem:[#allocation6 + $0xe]] }
  0x8d   : > { %v328_v24 = vadd.f32 %v327_v16, %v324_v19  ;;  %v391_v49 = vadd.f32 %v390_v33, %v387_v40  ;;  %v398_v50 = vmul.f32 %v397_v37, %v1423_v8  ;;  %v354_v51 = vstv %s1453_s26  ;;  %s1522_s29 = sld [smem:[#allocation6 + $0x34]]  ;;  %s1525_s16 = sld [smem:[#allocation6 + $0x12]]  ;;  %v1571_v33 = vld [vmem:[%s1388_s13 + $0xd] sm:$0x1] }
  0x8e   : > { %v358_v52 = vstv %s1455_s28  ;;  %v362_v53 = vstv %s1461_s30  ;;  %v405_v54 = vstv %s1463_s15  ;;  %v351_v57 = vmul.f32 %v350_v43, %v1492_v42  ;;  %s1527_s26 = sld [smem:[#allocation6 + $0x38]]  ;;  %s1531_s28 = sld [smem:[#allocation6 + $0x29]] }
  0x8f   : > { %v332_v30 = vadd.f32 %v331_v20, %v328_v24  ;;  %v395_v58 = vadd.f32 %v394_v41, %v391_v49  ;;  %v402_v59 = vmul.f32 %v401_v44, %v1436_v13  ;;  %v409_v60 = vstv %s1472_s0  ;;  %s1535_s30 = sld [smem:[#allocation6 + $0x16]]  ;;  %s1539_s15 = sld [smem:[#allocation6 + $0x3c]] }
  0x90   : > { %v413_v61 = vstv %s1474_s23  ;;  %v355_v63 = vmul.f32 %v354_v51, %v1501_v45  ;;  %v406_v4 = vmul.f32 %v405_v54, %v1445_v17  ;;  %v359_v5 = vmul.f32 %v358_v52, %v1504_v46  ;;  %s1541_s0 = sld [smem:[#allocation6 + $0x2d]]  ;;  %s1546_s23 = sld [smem:[#allocation6 + $0x1a]] }
  0x91   : > { %v336_v38 = vadd.f32 %v335_v25, %v332_v30  ;;  %v399_v3 = vadd.f32 %v398_v50, %v395_v58  ;;  %v363_v6 = vmul.f32 %v362_v53, %v1519_v55  ;;  %v454_v7 = vstv %s1485_s27  ;;  %s1549_s1 = sld [smem:[#allocation6 + $0x31]]  ;;  %s1556_s27 = sld [smem:[#allocation6 + $0x1e]] }
  0x92   : > { %v410_v11 = vmul.f32 %v409_v60, %v1458_v21  ;;  %v414_v12 = vmul.f32 %v413_v61, %v1466_v23  ;;  %v417_v14 = vstv %s1489_s7  ;;  %v455_v15 = vmul.f32 %v454_v7, %v1409_v0  ;;  %s1559_s7 = sld [smem:[#allocation6 + $0x35]] }
  0x93   : > { %v340_v47 = vadd.f32 %v339_v31, %v336_v38  ;;  %v403_v10 = vadd.f32 %v402_v59, %v399_v3  ;;  %v457_v16 = vstv %s1496_s6  ;;  %v460_v18 = vstv %s1498_s10  ;;  %s1563_s6 = sld [smem:[#allocation6 + $0x22]]  ;;  %s1566_s10 = sld [smem:[#allocation6 + $0x40]] }
  0x94   : > { %v461_v22 = vmul.f32 %v460_v18, %v1414_v1  ;;  %v464_v24 = vstv %s1508_s14  ;;  %v421_v25 = vstv %s1514_s17  ;;  %v458_v26 = vadd.f32 %v457_v16, %v455_v15  ;;  %s1576_s14 = sld [smem:[#allocation6 + $0x26]]  ;;  %s1578_s17 = sld [smem:[#allocation6 + $0x3]] }
  0x95   : > { %v344_v56 = vadd.f32 %v343_v39, %v340_v47  ;;  %v407_v20 = vadd.f32 %v406_v4, %v403_v10  ;;  %v465_v27 = vmul.f32 %v464_v24, %v1417_v2  ;;  %v468_v28 = vstv %s1516_s24  ;;  %v1581_v39 = vld [vmem:[%s1388_s13 + $0xe] sm:$0x1]  ;;  %s1588_s24 = sld [smem:[#allocation7 + $0x3]] }
  0x96   : > { %v366_v29 = vstv %s1522_s29  ;;  %v418_v31 = vmul.f32 %v417_v14, %v1480_v34  ;;  %v472_v32 = vstv %s1525_s16  ;;  %v370_v35 = vstv %s1527_s26  ;;  %s1590_s29 = sld [smem:[#allocation6 + $0x7]]  ;;  %s1595_s16 = sld [smem:[#allocation6 + $0x2a]] }
  0x97   : > { %v348_v62 = vadd.f32 %v347_v48, %v344_v56  ;;  %v411_v30 = vadd.f32 %v410_v11, %v407_v20  ;;  %v425_v36 = vstv %s1531_s28  ;;  %v462_v37 = vadd.f32 %v461_v22, %v458_v26  ;;  %s1597_s26 = sld [smem:[#allocation6 + $0xb]]  ;;  %v1600_v56 = vld [vmem:[%s1388_s13 + $0xf] sm:$0x1]  ;;  %s1604_s28 = sld [smem:[#allocation6 + $0x39]] }
  0x98   : > { %v469_v38 = vmul.f32 %v468_v28, %v1423_v8  ;;  %v422_v43 = vmul.f32 %v421_v25, %v1492_v42  ;;  %v476_v44 = vstv %s1535_s30  ;;  %v374_v47 = vstv %s1539_s15  ;;  %s1607_s30 = sld [smem:[#allocation6 + $0xf]]  ;;  %s1611_s15 = sld [smem:[#allocation6 + $0x2e]] }
  0x99   : > { %v352_v9 = vadd.f32 %v351_v57, %v348_v62  ;;  %v415_v41 = vadd.f32 %v414_v12, %v411_v30  ;;  %v429_v48 = vstv %s1541_s0  ;;  %v466_v49 = vadd.f32 %v465_v27, %v462_v37  ;;  %s1613_s0 = sld [smem:[#allocation6 + $0x13]] }
  0x9a   : > { %v473_v50 = vmul.f32 %v472_v32, %v1436_v13  ;;  %v367_v51 = vmul.f32 %v366_v29, %v1571_v33  ;;  %v426_v53 = vmul.f32 %v425_v36, %v1501_v45  ;;  %v480_v54 = vstv %s1546_s23  ;;  %s1623_s23 = sld [smem:[#allocation6 + $0x32]] }
  0x9b   : > { %v356_v19 = vadd.f32 %v355_v63, %v352_v9  ;;  %v419_v52 = vadd.f32 %v418_v31, %v415_v41  ;;  %v371_v57 = vmul.f32 %v370_v35, %v1581_v39  ;;  %v433_v58 = vstv %s1549_s1  ;;  %s1616_s1 = sld [smem:[#allocation6 + $0x3d]] }
  0x9c   : > { %v470_v59 = vadd.f32 %v469_v38, %v466_v49  ;;  %v477_v60 = vmul.f32 %v476_v44, %v1445_v17  ;;  %v430_v63 = vmul.f32 %v429_v48, %v1504_v46  ;;  %v484_v3 = vstv %s1556_s27  ;;  %s1625_s27 = sld [smem:[#allocation6 + $0x17]] }
  0x9d   : > { %v360_v40 = vadd.f32 %v359_v5, %v356_v19  ;;  %v423_v62 = vadd.f32 %v422_v43, %v419_v52  ;;  %v437_v4 = vstv %s1559_s7  ;;  %v481_v7 = vmul.f32 %v480_v54, %v1458_v21  ;;  %s1632_s7 = sld [smem:[#allocation6 + $0x36]]  ;;  %v1666_v52 = vld [vmem:[%s1388_s13 + $0x10] sm:$0x1]  ;;  %s1679_s13 = sld [smem:[#allocation6 + $0x42]] }
  0x9e   : > { %v474_v5 = vadd.f32 %v473_v50, %v470_v59  ;;  %v488_v9 = vstv %s1563_s6  ;;  %v375_v10 = vmul.f32 %v374_v47, %v1600_v56  ;;  %v434_v12 = vmul.f32 %v433_v58, %v1519_v55  ;;  %s1634_s6 = sld [smem:[#allocation6 + $0x1b]] }
  0x9f   : > { %v364_v61 = vadd.f32 %v363_v6, %v360_v40  ;;  %v378_v6 = vstv %s1566_s10  ;;  %v427_v11 = vadd.f32 %v426_v53, %v423_v62  ;;  %v485_v15 = vmul.f32 %v484_v3, %v1466_v23  ;;  %s1641_s10 = sld [smem:[#allocation6 + $0x3a]] }
  0xa0   : > { %v478_v14 = vadd.f32 %v477_v60, %v474_v5  ;;  %v492_v16 = vstv %s1576_s14  ;;  %v525_v18 = vstv %s1578_s17  ;;  %v438_v22 = vmul.f32 %v437_v4, %v1571_v33  ;;  %s1645_s14 = sld [smem:[#allocation6 + $0x1f]]  ;;  %s1650_s17 = sld [smem:[#allocation6 + $0x41]] }
  0xa1   : > { %v368_v19 = vadd.f32 %v367_v51, %v364_v61  ;;  %v431_v20 = vadd.f32 %v430_v63, %v427_v11  ;;  %v489_v24 = vmul.f32 %v488_v9, %v1480_v34  ;;  %v526_v26 = vmul.f32 %v525_v18, %v1409_v0 }
  0xa2   : > { %v482_v25 = vadd.f32 %v481_v7, %v478_v14  ;;  %v528_v27 = vstv %s1588_s24  ;;  %v531_v28 = vstv %s1590_s29  ;;  %v493_v29 = vmul.f32 %v492_v16, %v1492_v42  ;;  %s1654_s24 = sld [smem:[#allocation6 + $0x23]]  ;;  %s1660_s29 = sld [smem:[#allocation6 + $0x3e]] }
  0xa3   : > { %v496_v30 = vstv %s1595_s16  ;;  %v532_v31 = vmul.f32 %v531_v28, %v1414_v1  ;;  %v535_v32 = vstv %s1597_s26  ;;  %v529_v36 = vadd.f32 %v528_v27, %v526_v26  ;;  %s1663_s16 = sld [smem:[#allocation6 + $0x27]]  ;;  %s1673_s26 = sld [smem:[#allocation6 + $0x2b]] }
  0xa4   : > { %v486_v35 = vadd.f32 %v485_v15, %v482_v25  ;;  %v536_v0 = vmul.f32 %v535_v32, %v1417_v2  ;;  %v539_v37 = vstv %s1607_s30  ;;  %v435_v38 = vadd.f32 %v434_v12, %v431_v20  ;;  %s1689_s30 = sld [smem:[#allocation6 + $0x33]] }
  0xa5   : > { %v441_v40 = vstv %s1604_s28  ;;  %v500_v41 = vstv %s1611_s15  ;;  %v543_v43 = vstv %s1613_s0  ;;  %v497_v44 = vmul.f32 %v496_v30, %v1501_v45  ;;  %s1682_s28 = sld [smem:[#allocation6 + $0x2f]]  ;;  %s1700_s0 = sld [smem:[#allocation6 + $0x3b]] }
  0xa6   : > { %v490_v1 = vadd.f32 %v489_v24, %v486_v35  ;;  %v533_v47 = vadd.f32 %v532_v31, %v529_v36  ;;  %v540_v48 = vmul.f32 %v539_v37, %v1423_v8  ;;  %v372_v2 = vadd.f32 %v371_v57, %v368_v19  ;;  %s1695_s15 = sld [smem:[#allocation6 + $0x37]] }
  0xa7   : > { %v445_v49 = vstv %s1616_s1  ;;  %v504_v50 = vstv %s1623_s23  ;;  %v547_v51 = vstv %s1625_s27  ;;  %v501_v54 = vmul.f32 %v500_v41, %v1504_v46  ;;  %s1706_s1 = sld [smem:[#allocation6 + $0x3f]]  ;;  %s1710_s23 = sld [smem:[#allocation6 + $0x43]] }
  0xa8   : > { %v494_v53 = vadd.f32 %v493_v29, %v490_v1  ;;  %v537_v58 = vadd.f32 %v536_v0, %v533_v47  ;;  %v544_v59 = vmul.f32 %v543_v43, %v1436_v13  ;;  %v439_v60 = vadd.f32 %v438_v22, %v435_v38  ;;  %s1714_s27 = sld [smem:[#allocation9]] }
  0xa9   : > { %v442_v8 = vmul.f32 %v441_v40, %v1581_v39  ;;  %v508_v57 = vstv %s1632_s7  ;;  %v551_v61 = vstv %s1634_s6  ;;  %v505_v63 = vmul.f32 %v504_v50, %v1519_v55  ;;  %s1717_s7 = sld [smem:[#allocation9 + $0x1]]  ;;  %s1720_s6 = sld [smem:[#allocation9 + $0x2]] }
  0xaa   : > { %v498_v62 = vadd.f32 %v497_v44, %v494_v53  ;;  %v541_v3 = vadd.f32 %v540_v48, %v537_v58  ;;  %v548_v4 = vmul.f32 %v547_v51, %v1445_v17  ;;  %v376_v5 = vadd.f32 %v375_v10, %v372_v2 }
  0xab   : > { %v379_v7 = vmul.f32 %v378_v6, %v1666_v52  ;;  %v512_v9 = vstv %s1641_s10  ;;  %v555_v13 = vstv %s1645_s14  ;;  %v509_v12 = vmul.f32 %v508_v57, %v1571_v33  ;;  %s1723_s10 = sld [smem:[#allocation9 + $0x3]]  ;;  %s1726_s14 = sld [smem:[#allocation10]] }
  0xac   : > { %v502_v11 = vadd.f32 %v501_v54, %v498_v62  ;;  %v545_v14 = vadd.f32 %v544_v59, %v541_v3  ;;  %v552_v15 = vmul.f32 %v551_v61, %v1458_v21  ;;  %v443_v16 = vadd.f32 %v442_v8, %v439_v60 }
  0xad   : > { %v446_v17 = vmul.f32 %v445_v49, %v1600_v56  ;;  %v449_v10 = vstv %s1650_s17  ;;  %v559_v6 = vstv %s1654_s24  ;;  %v513_v19 = vmul.f32 %v512_v9, %v1581_v39  ;;  %s1728_s17 = sld [smem:[#allocation9 + $0x4]]  ;;  %s1731_s24 = sld [smem:[#allocation10 + $0x1]] }
  0xae   : > { %v506_v18 = vadd.f32 %v505_v63, %v502_v11  ;;  %v549_v20 = vadd.f32 %v548_v4, %v545_v14  ;;  %v556_v22 = vmul.f32 %v555_v13, %v1466_v23  ;;  %v516_v24 = vstv %s1660_s29  ;;  %s1733_s29 = sld [smem:[#allocation9 + $0x5]] }
  0xaf   : > { %v563_v25 = vstv %s1663_s16  ;;  %v380_v21 = vadd.f32 %v379_v7, %v376_v5  ;;  %v560_v28 = vmul.f32 %v559_v6, %v1480_v34  ;;  %v447_v29 = vadd.f32 %v446_v17, %v443_v16  ;;  %s1736_s16 = sld [smem:[#allocation10 + $0x2]] }
  0xb0   : > { %v510_v26 = vadd.f32 %v509_v12, %v506_v18  ;;  %v553_v27 = vadd.f32 %v552_v15, %v549_v20  ;;  %v450_v30 = vmul.f32 %v449_v10, %v1666_v52  ;;  %v567_v31 = vstv %s1673_s26  ;;  %s1738_s26 = sld [smem:[#allocation9 + $0x6]] }
  0xb1   : > { %v517_v23 = vmul.f32 %v516_v24, %v1600_v56  ;;  %v564_v36 = vmul.f32 %v563_v25, %v1492_v42  ;;  %v520_v0 = vstv %s1679_s13  ;;  %v571_v37 = vstv %s1682_s28  ;;  %s1741_s13 = sld [smem:[#allocation10 + $0x3]]  ;;  %s1743_s28 = sld [smem:[#allocation9 + $0x7]] }
  0xb2   : > { %v514_v32 = vadd.f32 %v513_v19, %v510_v26  ;;  %v557_v35 = vadd.f32 %v556_v22, %v553_v27  ;;  %998 = vtanh.f32 %v380_v21  ;;  %v568_v38 = vmul.f32 %v567_v31, %v1501_v45 }
  0xb3   : > { %v451_v40 = vadd.f32 %v450_v30, %v447_v29  ;;  %v575_v41 = vstv %s1689_s30  ;;  %v521_v1 = vmul.f32 %v520_v0, %v1666_v52  ;;  %v572_v42 = vmul.f32 %v571_v37, %v1504_v46  ;;  %s1747_s30 = sld [smem:[#allocation9 + $0x8]] }
  0xb4   : > { %v561_v34 = vadd.f32 %v560_v28, %v557_v35  ;;  %v518_v43 = vadd.f32 %v517_v23, %v514_v32  ;;  %v579_v47 = vstv %s1695_s15  ;;  %v576_v2 = vmul.f32 %v575_v41, %v1519_v55  ;;  %s1751_s15 = sld [smem:[#allocation9 + $0x9]] }
  0xb5   : > { %1000 = vtanh.f32 %v451_v40  ;;  %v583_v45 = vstv %s1700_s0  ;;  %v580_v51 = vmul.f32 %v579_v47, %v1571_v33  ;;  %v587_v46 = vstv %s1706_s1  ;;  %s1754_s0 = sld [smem:[#allocation9 + $0xa]]  ;;  %s1757_s1 = sld [smem:[#allocation9 + $0xb]] }
  0xb6   : > { %v565_v44 = vadd.f32 %v564_v36, %v561_v34  ;;  %v522_v49 = vadd.f32 %v521_v1, %v518_v43  ;;  %v584_v53 = vmul.f32 %v583_v45, %v1581_v39  ;;  %v591_v33 = vstv %s1710_s23  ;;  %s1765_s23 = sld [smem:[#allocation9 + $0xc]] }
  0xb7   : > { %v588_v59 = vmul.f32 %v587_v46, %v1600_v56  ;;  %v596_v60 = vstv %s1714_s27  ;;  %v616_v39 = vstv %s1717_s7  ;;  %v592_v57 = vmul.f32 %v591_v33, %v1666_v52  ;;  %s1767_s27 = sld [smem:[#allocation9 + $0xd]]  ;;  %s896_s7 = sld [smem:[#allocation9 + $0xe]] }
  0xb8   : > { %v569_v48 = vadd.f32 %v568_v38, %v565_v44  ;;  %1002 = vtanh.f32 %v522_v49  ;;  %v636_v61 = vstv %s1720_s6  ;;  %v656_v63 = vstv %s1723_s10  ;;  %s901_s6 = sld [smem:[#allocation9 + $0xf]]  ;;  %s813_s10 = sshll.u32 %s1384_s11, 2 }
  0xb9   : > { %v599_v3 = vstv %s1726_s14  ;;  %v602_v7 = vstv %s1728_s17  ;;  %v619_v9 = vstv %s1731_s24  ;;  %v622_v52 = vstv %s1733_s29  ;;  %s903_s14 = sshll.u32 %s1244_s22, 6  ;;  %s293_s17 = scalar_lea.vmem [#allocation12], %s813_s10 }
  0xba   : > { %v573_v50 = vadd.f32 %v572_v42, %v569_v48  ;;  %v639_v12 = vstv %s1736_s16  ;;  %v642_v14 = vstv %s1738_s26  ;;  %v659_v17 = vstv %s1741_s13  ;;  %s689_s24 = sshll.u32 %s293_s17, 4  ;;  %s1782_s26 = scalar_lea.hbm %s1831_s5, %s903_s14  ;;  %s1784_s24 = int_to_ptr.vmem [resolvable:$true] %s689_s24 }
  0xbb   : > { %v662_v10 = vstv %s1743_s28  ;;  %v606_v20 = vstv %s1747_s30  ;;  %v626_v21 = vstv %s1751_s15  ;;  %v646_v26 = vstv %s1754_s0  ;;  %s676_s22 = scalar_lea.sflag [#allocation4], %s1384_s11  ;;  %s1104_s13 = scalar_lea.vmem %s1784_s24, 64 }
  0xbc   : > { %v577_v55 = vadd.f32 %v576_v2, %v573_v50  ;;  %v999_v54 = vpop.eup %998  ;;  %v666_v29 = vstv %s1757_s1  ;;  %v610_v34 = vstv %s1765_s23  ;;  %p1105_p7 = scmp.ne.s32.totalorder %s1784_s24, %s1104_s13  ;;  %s1192_s28 = smov [#allocation12]  }
  0xbd   : > { %v597_v62 = vmul.f32 %v999_v54, %v596_v60  ;;  %v617_v4 = vmul.f32 %v999_v54, %v616_v39  ;;  %v637_v13 = vmul.f32 %v999_v54, %v636_v61  ;;  %v657_v15 = vmul.f32 %v999_v54, %v656_v63  ;;  %s1108_s30 = sshll.u32 %s1192_s28, 4  ;;  %s1109_s30 = int_to_ptr.vmem [resolvable:$false] %s1108_s30 }
  0xbe   : > { %v581_v58 = vadd.f32 %v580_v51, %v577_v55  ;;  %v630_v38 = vstv %s1767_s27  ;;  %v650_v40 = vstv %s896_s7  ;;  %v670_v41 = vstv %s901_s6  ;;  %p1106_p12 = pnand %p1105_p7, %p1335_p6  ;;  %s1110_s15 = scalar_lea.vmem %s1109_s30, 128 }
  0xbf   : > { %v1001_v5 = vpop.eup %1000  ;;  %v600_v16 = vadd.f32 %v599_v3, %v597_v62  ;;  %v620_v18 = vadd.f32 %v619_v9, %v617_v4  ;;  %v640_v22 = vadd.f32 %v639_v12, %v637_v13  ;;  %v660_v27 = vadd.f32 %v659_v17, %v657_v15  ;;  %p1111_p3 = scmp.lt.s32.totalorder %s1784_s24, %s1109_s30  ;;  %p1112_p13 = scmp.lt.s32.totalorder %s1110_s15, %s1104_s13 }
  0xc0   : > { %v585_v8 = vadd.f32 %v584_v53, %v581_v58  ;;  %v603_v6 = vmul.f32 %v1001_v5, %v602_v7  ;;  %v623_v19 = vmul.f32 %v1001_v5, %v622_v52  ;;  %v643_v24 = vmul.f32 %v1001_v5, %v642_v14  ;;  %p1107_p9 = pneg %p1106_p12 }
  0xc1   : > { %v663_v28 = vmul.f32 %v1001_v5, %v662_v10  ;;  %p1113_p10 = por %p1112_p13, %p1111_p3 }
  0xc2   : > { %v589_v56 = vadd.f32 %v588_v59, %v585_v8  ;;  %v1003_v25 = vpop.eup %1002  ;;  %v604_v30 = vadd.f32 %v603_v6, %v600_v16  ;;  %v624_v31 = vadd.f32 %v623_v19, %v620_v18  ;;  %v644_v35 = vadd.f32 %v643_v24, %v640_v22 }
  0xc3   : > { %v607_v32 = vmul.f32 %v1003_v25, %v606_v20  ;;  %v627_v23 = vmul.f32 %v1003_v25, %v626_v21  ;;  %v647_v36 = vmul.f32 %v1003_v25, %v646_v26  ;;  %v664_v0 = vadd.f32 %v663_v28, %v660_v27  ;;  %p1114_p0 = pnand %p1113_p10, %p1107_p9 }
  0xc4   : > { %v593_v11 = vadd.f32 %v592_v57, %v589_v56  ;;  %v667_v37 = vmul.f32 %v1003_v25, %v666_v29 }
  0xc5   : > { %v608_v43 = vadd.f32 %v607_v32, %v604_v30  ;;  %v628_v1 = vadd.f32 %v627_v23, %v624_v31  ;;  %v648_v44 = vadd.f32 %v647_v36, %v644_v35 }
  0xc6   : > { %1004 = vtanh.f32 %v593_v11  ;;  %v668_v47 = vadd.f32 %v667_v37, %v664_v0 }
  0xd0   : > { %v1005_v42 = vpop.eup %1004 }
  0xd1   : > { %v611_v48 = vmul.f32 %v1005_v42, %v610_v34  ;;  %v631_v2 = vmul.f32 %v1005_v42, %v630_v38  ;;  %v651_v45 = vmul.f32 %v1005_v42, %v650_v40  ;;  %v671_v49 = vmul.f32 %v1005_v42, %v670_v41 }
  0xd3   : > { %v612_v50 = vadd.f32 %v611_v48, %v608_v43  ;;  %v632_v51 = vadd.f32 %v631_v2, %v628_v1  ;;  %v652_v46 = vadd.f32 %v651_v45, %v648_v44  ;;  %v672_v55 = vadd.f32 %v671_v49, %v668_v47 }
  0xd5   : > { %1006 = vtanh.f32 %v612_v50 }
  0xd6   : > { %1008 = vtanh.f32 %v632_v51 }
  0xd7   : > { %1010 = vtanh.f32 %v652_v46 }
  0xd8   : > { %1012 = vtanh.f32 %v672_v55 }
  0xdf   : > { %v1007_v53 = vpop.eup %1006 }
  0xe0   : > { %v1009_v33 = vpop.eup %1008  ;;  %614 = vst [vmem:[%s293_s17] sm:$0x1] %v1007_v53 }
  0xe1   : > { %v1011_v54 = vpop.eup %1010  ;;  %634 = vst [vmem:[%s293_s17 + $0x1] sm:$0x1] %v1009_v33 }
  0xe2   : > { %v1013_v58 = vpop.eup %1012  ;;  %654 = vst [vmem:[%s293_s17 + $0x2] sm:$0x1] %v1011_v54 }
  0xe3   : > { %674 = vst [vmem:[%s293_s17 + $0x3] sm:$0x1] %v1013_v58 }
  0xe4   : > { %1117 = shalt.err (!%p1114_p0)
}
  0xe5   : > { %s1118_s11 = scalar_lea.hbm %s1782_s26, 64  ;;  %s1122_s23 = scalar_lea.hbm %s1831_s5, 128 }
  0xe6   : > { %p1119_p11 = scmp.ne.s32.totalorder %s1782_s26, %s1118_s11  ;;  %p1123_p5 = scmp.lt.u32.totalorder %s1782_s26, %s1831_s5 }
  0xe7   : > { %p1124_p4 = scmp.lt.u32.totalorder %s1122_s23, %s1118_s11  ;;  %p1126_p7 = scmp.lt.u32.totalorder %s1118_s11, %s1782_s26 }
  0xe8   : > { %p1120_p1 = pnand %p1119_p11, %p1335_p6 }
  0xe9   : > { %p1125_p8 = por %p1124_p4, %p1123_p5 }
  0xea   : > { %p1121_p2 = pneg %p1120_p1 }
  0xeb   : > { %p1127_p12 = por %p1126_p7, %p1125_p8 }
  0xed   : > { %p1128_p9 = pnand %p1127_p12, %p1121_p2 }
  0xef   : > { %1131 = shalt.err (!%p1128_p9)
}
  0xf0   : > { %926 = dma.vmem_to_hbm [thread:$0]  (%p1335_p6), %s1784_s24, 64, %s1782_s26, %s676_s22  }
  0xf1 PF: > { %s701_s6 = sand.u32 1, %s1170_s18   ;;  %p1854_p3 = scmp.ne.s32.totalorder %s1838_s25, 0 }
  0xf2   : > { %p1855_p13 = scmp.ge.s32.totalorder %s1182_s21, 2  ;;  %s702_s10 = scalar_lea.sflag [#allocation4], %s701_s6 }
  0xf4   : > { %p946_p10 = pnand %p1855_p13, %p1854_p3 }
  0xf6   : > { %1165 = dma.done.wait (!%p946_p10), %s702_s10, 64  }
  0xf7   : > { %1167 = vsyncadd (!%p946_p10), %s702_s10, 4294967232  ;;  %p21_p0 = scmp.ge.s32.totalorder %s1322_s9, 4   ;;  %s1856_s18 = smov %s1174_s19 }
  0xf8   : > { %s1857_s19 = smov %s1178_s20  ;;  %s1858_s20 = smov %s1331_s8 }
  0xf9   : > { %s1859_s21 = smov %s1322_s9  ;;  %23 = sbr.rel (!%p21_p0) target bundleno = 11 (0xb), region = 102 }
 0x100   :  { %707 = vsyncpa [#allocation3], 1 }
 0x101   :  { %709 = vsyncpa [#allocation3 + $0x1], 1 }
 0x102   :  { %710 = vsyncpa [#allocation4], 1 }
 0x103   :  { %712 = vsyncpa [#allocation4 + $0x1], 1 }
 0x104   :  { %713 = vsyncpa [#allocation5], 1 }
 0x105   :  { %715 = vsyncpa [#allocation5 + $0x1], 1 }
 0x106   :  { %716 = vsyncpa [#allocation8], 1 }
 0x107   :  { %717 = vsyncpa [#allocation11], 1 }

</bundles_post_ra>
